<compile_context>
chip_gen: v5e
topology: v5e:2x2
jax: 0.10.0
libtpu: 0.0.40
codegen_flags: <defaults>
</compile_context>

<pallas_src>
import jax
import jax.numpy as jnp
from jax.experimental import pallas as pl
from jax.experimental.pallas import tpu as pltpu

# ----------------------------- synthetic upstream / featurizer config -----------------------------
NUM_LAYERS = 3          # upstream._num_layers
HIDDEN_SIZE = 32        # upstream._hidden_sizes (same for every layer)
STRIDE = 8              # upstream._downsample_rates (same for every layer)
KERNEL = 16             # frame receptive field (== 2 * STRIDE -> gather-free unfold)
OUT_LANES = (NUM_LAYERS + 1) * HIDDEN_SIZE   # 128: [layer0 | layer1 | layer2 | weighted sum]
TM = 128                # row tile (sublane / MXU aligned)

assert KERNEL == 2 * STRIDE
assert OUT_LANES % 128 == 0, "output slab must be lane-dense (multiple of 128)"


# ----------------------------- Pallas kernel (single fused call) -----------------------------
def _fused_featurizer_kernel(frames_ref, wc_ref, bc_ref, wall_ref, ball_ref, o_ref):
    """One row-tile of the whole pipeline, everything VMEM-resident.

    frames_ref: (TM, KERNEL)           bf16
    wc_ref:     (KERNEL, HIDDEN)       bf16   frontend conv-as-matmul weight
    bc_ref:     (1, HIDDEN)            f32    frontend bias
    wall_ref:   (HIDDEN, OUT_LANES)    bf16   [W_cum_1 | W_cum_2 | W_cum_3 | W_weighted]
    ball_ref:   (1, OUT_LANES)         f32    matching cumulative biases
    o_ref:      (TM, OUT_LANES)        f32    [layer0 | layer1 | layer2 | weighted]
    """
    # frontend: feat = gelu(frames @ Wc + bc)  -- bf16 operands, f32 accumulation (MXU)
    acc = jnp.dot(frames_ref[...], wc_ref[...], preferred_element_type=jnp.float32)
    acc = acc + bc_ref[...]
    c = jnp.float32(0.7978845608028654)  # sqrt(2/pi); tanh-approx GELU (EUP-friendly)
    feat = 0.5 * acc * (1.0 + jnp.tanh(c * (acc + 0.044715 * acc * acc * acc)))

    # all layers + Featurizer weighted-sum as ONE lane-dense (TM,32)@(32,128) matmul
    out = jnp.dot(feat.astype(jnp.bfloat16), wall_ref[...],
                  preferred_element_type=jnp.float32)
    o_ref[...] = (out + ball_ref[...]).astype(o_ref.dtype)


def fused_featurizer_pallas(frames2d_bf16, wc_bf16, bc_f32, w_all_bf16, b_all_f32):
    """frames2d: (M_pad, KERNEL) bf16, M_pad % TM == 0  ->  (M_pad, OUT_LANES) f32."""
    M_pad, K = frames2d_bf16.shape
    assert M_pad % TM == 0 and K == KERNEL
    grid = (M_pad // TM,)
    return pl.pallas_call(
        _fused_featurizer_kernel,
        out_shape=jax.ShapeDtypeStruct((M_pad, OUT_LANES), jnp.float32),
        grid=grid,
        in_specs=[
            pl.BlockSpec((TM, KERNEL), lambda i: (i, 0)),
            pl.BlockSpec((KERNEL, HIDDEN_SIZE), lambda i: (0, 0)),
            pl.BlockSpec((1, HIDDEN_SIZE), lambda i: (0, 0)),
            pl.BlockSpec((HIDDEN_SIZE, OUT_LANES), lambda i: (0, 0)),
            pl.BlockSpec((1, OUT_LANES), lambda i: (0, 0)),
        ],
        out_specs=pl.BlockSpec((TM, OUT_LANES), lambda i: (i, 0)),
        compiler_params=pltpu.CompilerParams(
            dimension_semantics=("parallel",)  # M tiles independent -> 2 TCs on v7x
        ),
    )(frames2d_bf16, wc_bf16, bc_f32, w_all_bf16, b_all_f32)


# ----------------------------- glue (plain JAX, layout-only) -----------------------------
def _unfold_frames(wavs, wavs_len):
    """(B, T) -> (B, T', KERNEL) gather-free: KERNEL == 2*STRIDE, so frame i is the
    concatenation of stride-8 chunks i and i+1 (pure reshape / slice / concat)."""
    B, T = wavs.shape
    assert T % STRIDE == 0
    t = jnp.arange(T)[None, :]
    wavs = jnp.where(t < wavs_len[:, None], wavs, 0.0)   # emulate wav[:wav_len]
    chunks = wavs.reshape(B, T // STRIDE, STRIDE)
    frames = jnp.concatenate([chunks[:, :-1, :], chunks[:, 1:, :]], axis=-1)
    n_frames = T // STRIDE - 1                            # == (T - KERNEL)//STRIDE + 1
    return frames, n_frames


def _match_length(xs, target_max_len):
    """Same semantics as S3PRLUpstream._match_length (static shapes)."""
    xs_max_len = xs.shape[1]
    if xs_max_len > target_max_len:
        assert round(xs_max_len / target_max_len) == 1
        xs = xs[:, :target_max_len, :]
    elif xs_max_len < target_max_len:
        assert round(target_max_len / xs_max_len) == 1
        pad = jnp.repeat(xs[:, -1:, :], target_max_len - xs_max_len, axis=1)
        xs = jnp.concatenate([xs, pad], axis=1)
    return xs


def init_params(key):
    ks = jax.random.split(key, 2 + 2 * NUM_LAYERS)
    params = {
        "conv_w": 0.02 * jax.random.normal(ks[0], (KERNEL, HIDDEN_SIZE), jnp.float32),
        "conv_b": 0.02 * jax.random.normal(ks[1], (HIDDEN_SIZE,), jnp.float32),
        "layer_w": [],
        "layer_b": [],
        # Featurizer trainable layer weights (nn.Parameter(torch.zeros(L)))
        "featurizer_weights": jnp.zeros((NUM_LAYERS,), jnp.float32),
    }
    for l in range(NUM_LAYERS):
        params["layer_w"].append(
            0.02 * jax.random.normal(ks[2 + 2 * l], (HIDDEN_SIZE, HIDDEN_SIZE), jnp.float32)
        )
        params["layer_b"].append(
            0.02 * jax.random.normal(ks[3 + 2 * l], (HIDDEN_SIZE,), jnp.float32)
        )
    return params


@jax.jit
def featurizer_forward(params, wavs, wavs_len):
    """
    wavs:     (B, T) float32
    wavs_len: (B,)   int32
    Returns:  (hs, hs_len, all_hs, all_lens)
      hs:       (B, max_seq_len, HIDDEN_SIZE) f32  -- Featurizer weighted-sum output
      hs_len:   (B,) int32
      all_hs:   List[(B, max_seq_len, HIDDEN_SIZE) f32], len == NUM_LAYERS
      all_lens: List[(B,) int32], len == NUM_LAYERS
    """
    B, T = wavs.shape
    frames, n_frames = _unfold_frames(wavs, wavs_len)         # (B, T', K)
    M = B * n_frames
    M_pad = pl.cdiv(M, TM) * TM                                # round rows up to tile
    frames2d = frames.reshape(M, KERNEL)
    frames2d = jnp.pad(frames2d, ((0, M_pad - M), (0, 0))).astype(jnp.bfloat16)

    # Collapse the affine layer stack + Featurizer softmax weighted-sum into one
    # (HIDDEN, 128) weight slab: columns = [W_cum_1 | W_cum_2 | W_cum_3 | W_weighted].
    # (Valid only while layers are affine; revisit if nonlinearities are added.)
    nw = jax.nn.softmax(params["featurizer_weights"])
    w_cum, b_cum = [], []
    for l in range(NUM_LAYERS):
        if l == 0:
            wl, bl = params["layer_w"][0], params["layer_b"][0]
        else:
            wl = w_cum[l - 1] @ params["layer_w"][l]
            bl = b_cum[l - 1] @ params["layer_w"][l] + params["layer_b"][l]
        w_cum.append(wl)
        b_cum.append(bl)
    w_sum = sum(nw[l] * w_cum[l] for l in range(NUM_LAYERS))
    b_sum = sum(nw[l] * b_cum[l] for l in range(NUM_LAYERS))
    w_all = jnp.concatenate(w_cum + [w_sum], axis=1).astype(jnp.bfloat16)   # (32, 128)
    b_all = jnp.concatenate(b_cum + [b_sum], axis=0).reshape(1, OUT_LANES)  # (1, 128) f32

    wc = params["conv_w"].astype(jnp.bfloat16)
    bc = params["conv_b"].reshape(1, HIDDEN_SIZE)

    # single fused Pallas call: frontend + all layers + weighted sum
    slab = fused_featurizer_pallas(frames2d, wc, bc, w_all, b_all)  # (M_pad, 128) f32
    slab = slab[:M].reshape(B, n_frames, OUT_LANES)

    # length matching applied ONCE to the stacked 128-wide slab
    # (static max; max(wavs_len) == T in this example, matching the original module)
    expected_max_h_len = T // STRIDE + 1
    slab = _match_length(slab, expected_max_h_len)
    stacked = slab.reshape(B, expected_max_h_len, NUM_LAYERS + 1, HIDDEN_SIZE)

    h_len = (wavs_len // STRIDE + 1).astype(jnp.int32)
    all_hs = [stacked[:, :, l, :] for l in range(NUM_LAYERS)]
    all_lens = [h_len] * NUM_LAYERS
    hs = stacked[:, :, NUM_LAYERS, :]          # Featurizer output (softmax-weighted sum)
    hs_len = all_lens[0]
    return hs, hs_len, all_hs, all_lens


# ----------------------------- pure-JAX reference (non-fused) -----------------------------
def _gelu_tanh(x):
    c = 0.7978845608028654
    return 0.5 * x * (1.0 + jnp.tanh(c * (x + 0.044715 * x * x * x)))


def reference_forward(params, wavs, wavs_len):
    B, T = wavs.shape
    t = jnp.arange(T)[None, :]
    w = jnp.where(t < wavs_len[:, None], wavs, 0.0)
    n_frames = (T - KERNEL) // STRIDE + 1
    idx = jnp.arange(n_frames)[:, None] * STRIDE + jnp.arange(KERNEL)[None, :]
    frames = w[:, idx].reshape(B * n_frames, KERNEL)
    feat = _gelu_tanh(frames @ params["conv_w"] + params["conv_b"])
    expected_max_h_len = T // STRIDE + 1
    hs_list, h = [], feat
    for l in range(NUM_LAYERS):
        h = h @ params["layer_w"][l] + params["layer_b"][l]
        hs_list.append(_match_length(h.reshape(B, n_frames, HIDDEN_SIZE),
                                     expected_max_h_len))
    nw = jax.nn.softmax(params["featurizer_weights"])
    weighted = sum(nw[l] * hs_list[l] for l in range(NUM_LAYERS))
    return weighted, hs_list


# TODO(synk): the real checkpoint-loaded upstream (hubert/wav2vec2 transformer stack)
# has no clean in-script equivalent; replaced by a deterministic synthetic affine
# upstream with identical output interface.  Featurizer normalize=True (layer norm)
# and layer_selections subsets are not exercised (defaults used).

if __name__ == "__main__":
    key = jax.random.PRNGKey(0)
    pkey, wkey = jax.random.split(key)
    params = init_params(pkey)

    B, T = 2, 400
    wavs = jax.random.normal(wkey, (B, T), jnp.float32)
    wavs_len = jnp.array([320, 400], dtype=jnp.int32)

    hs, hs_len, all_hs, all_lens = featurizer_forward(params, wavs, wavs_len)
    hs = jax.block_until_ready(hs)
    hs_len = jax.block_until_ready(hs_len)
    all_hs = [jax.block_until_ready(h) for h in all_hs]
    all_lens = [jax.block_until_ready(l) for l in all_lens]

    expected_len = T // STRIDE + 1
    # interface checks (mirror the PyTorch docstring assertions)
    assert len(all_hs) == NUM_LAYERS and len(all_lens) == NUM_LAYERS
    for h, l in zip(all_hs, all_lens):
        assert h.dtype == jnp.float32
        assert h.shape == (B, expected_len, HIDDEN_SIZE)
        assert l.ndim == 1 and l.shape[0] == B
    assert hs.dtype == jnp.float32
    assert hs.shape == (B, expected_len, HIDDEN_SIZE)
    assert hs_len.ndim == 1 and hs_len.shape[0] == B
    assert int(hs_len[0]) == 320 // STRIDE + 1
    assert int(hs_len[1]) == 400 // STRIDE + 1

    # numerical check vs. non-fused pure-JAX reference (bf16 MXU operands -> loose tol)
    ref_hs, ref_all_hs = reference_forward(params, wavs, wavs_len)
    for h, r in zip(all_hs, ref_all_hs):
        assert float(jnp.max(jnp.abs(h - r))) < 5e-3
    assert float(jnp.max(jnp.abs(hs - ref_hs))) < 5e-3

    print("KERNEL_OK")
</pallas_src>

<mosaic_0001>
module attributes {stable_mosaic.version = 11 : i64} {
  func.func @_fused_featurizer_kernel(%arg0: i32, %arg1: memref<128x16xbf16, #tpu.memory_space<vmem>>, %arg2: memref<16x32xbf16, #tpu.memory_space<vmem>>, %arg3: memref<1x32xf32, #tpu.memory_space<vmem>>, %arg4: memref<32x128xbf16, #tpu.memory_space<vmem>>, %arg5: memref<1x128xf32, #tpu.memory_space<vmem>>, %arg6: memref<128x128xf32, #tpu.memory_space<vmem>>) attributes {dimension_semantics = [#tpu.dimension_semantics<parallel>], iteration_bounds = array<i64: 1>, scalar_prefetch = 0 : i64, scratch_operands = 0 : i64, tpu.core_type = #tpu.core_type<tc>, window_params = [{transform_indices = @transform_0, window_bounds = array<i64: 128, 16>}, {pipeline_mode = #tpu.pipeline_mode<synchronous>, transform_indices = @transform_1, window_bounds = array<i64: 16, 32>}, {pipeline_mode = #tpu.pipeline_mode<synchronous>, transform_indices = @transform_2, window_bounds = array<i64: 1, 32>}, {pipeline_mode = #tpu.pipeline_mode<synchronous>, transform_indices = @transform_3, window_bounds = array<i64: 32, 128>}, {pipeline_mode = #tpu.pipeline_mode<synchronous>, transform_indices = @transform_4, window_bounds = array<i64: 1, 128>}, {transform_indices = @transform_5, window_bounds = array<i64: 128, 128>}]} {
    %c0 = arith.constant 0 : index
    %c0_0 = arith.constant 0 : index
    %0 = vector.load %arg1[%c0, %c0_0] : memref<128x16xbf16, #tpu.memory_space<vmem>>, vector<128x16xbf16>
    %c0_1 = arith.constant 0 : index
    %c0_2 = arith.constant 0 : index
    %1 = vector.load %arg2[%c0_1, %c0_2] : memref<16x32xbf16, #tpu.memory_space<vmem>>, vector<16x32xbf16>
    %cst = arith.constant dense<0.000000e+00> : vector<128x32xf32>
    %2 = tpu.matmul %0, %1, %cst {dimension_numbers = #tpu.dot_dimension_numbers<[1], [0], [0], [1], [0, 0, 1, 1], [], []>} : vector<128x16xbf16>, vector<16x32xbf16>, vector<128x32xf32> -> vector<128x32xf32>
    %c0_3 = arith.constant 0 : index
    %c0_4 = arith.constant 0 : index
    %3 = vector.load %arg3[%c0_3, %c0_4] : memref<1x32xf32, #tpu.memory_space<vmem>>, vector<1x32xf32>
    %4 = vector.broadcast %3 : vector<1x32xf32> to vector<128x32xf32>
    %5 = arith.addf %2, %4 : vector<128x32xf32>
    %cst_5 = arith.constant 5.000000e-01 : f32
    %6 = vector.broadcast %cst_5 : f32 to vector<128x32xf32>
    %7 = arith.mulf %6, %5 : vector<128x32xf32>
    %cst_6 = arith.constant 4.471500e-02 : f32
    %8 = vector.broadcast %cst_6 : f32 to vector<128x32xf32>
    %9 = arith.mulf %8, %5 : vector<128x32xf32>
    %10 = arith.mulf %9, %5 : vector<128x32xf32>
    %11 = arith.mulf %10, %5 : vector<128x32xf32>
    %12 = arith.addf %5, %11 : vector<128x32xf32>
    %cst_7 = arith.constant 0.797884583 : f32
    %13 = vector.broadcast %cst_7 : f32 to vector<128x32xf32>
    %14 = arith.mulf %13, %12 : vector<128x32xf32>
    %15 = math.tanh %14 : vector<128x32xf32>
    %cst_8 = arith.constant 1.000000e+00 : f32
    %16 = vector.broadcast %cst_8 : f32 to vector<128x32xf32>
    %17 = arith.addf %16, %15 : vector<128x32xf32>
    %18 = arith.mulf %7, %17 : vector<128x32xf32>
    %19 = arith.truncf %18 : vector<128x32xf32> to vector<128x32xbf16>
    %c0_9 = arith.constant 0 : index
    %c0_10 = arith.constant 0 : index
    %20 = vector.load %arg4[%c0_9, %c0_10] : memref<32x128xbf16, #tpu.memory_space<vmem>>, vector<32x128xbf16>
    %cst_11 = arith.constant dense<0.000000e+00> : vector<128x128xf32>
    %21 = tpu.matmul %19, %20, %cst_11 {dimension_numbers = #tpu.dot_dimension_numbers<[1], [0], [0], [1], [0, 0, 1, 1], [], []>} : vector<128x32xbf16>, vector<32x128xbf16>, vector<128x128xf32> -> vector<128x128xf32>
    %c0_12 = arith.constant 0 : index
    %c0_13 = arith.constant 0 : index
    %22 = vector.load %arg5[%c0_12, %c0_13] : memref<1x128xf32, #tpu.memory_space<vmem>>, vector<1x128xf32>
    %23 = vector.broadcast %22 : vector<1x128xf32> to vector<128x128xf32>
    %24 = arith.addf %21, %23 : vector<128x128xf32>
    %c0_14 = arith.constant 0 : index
    %c0_15 = arith.constant 0 : index
    %25 = vector.load %arg6[%c0_14, %c0_15] : memref<128x128xf32, #tpu.memory_space<vmem>>, vector<128x128xf32>
    tpu.vector_store %arg6[%c0_14, %c0_15], %24 {strides = array<i32>} : memref<128x128xf32, #tpu.memory_space<vmem>>, vector<128x128xf32>,
    return
  }
  func.func @transform_0(%arg0: i32) -> (i32, i32) {
    %c0_i32 = arith.constant 0 : i32
    %c0_i32_0 = arith.constant 0 : i32
    return %arg0, %c0_i32 : i32, i32
  }
  func.func @transform_1(%arg0: i32) -> (i32, i32) {
    %c0_i32 = arith.constant 0 : i32
    %c0_i32_0 = arith.constant 0 : i32
    %c0_i32_1 = arith.constant 0 : i32
    return %c0_i32, %c0_i32_0 : i32, i32
  }
  func.func @transform_2(%arg0: i32) -> (i32, i32) {
    %c0_i32 = arith.constant 0 : i32
    %c0_i32_0 = arith.constant 0 : i32
    %c0_i32_1 = arith.constant 0 : i32
    return %c0_i32, %c0_i32_0 : i32, i32
  }
  func.func @transform_3(%arg0: i32) -> (i32, i32) {
    %c0_i32 = arith.constant 0 : i32
    %c0_i32_0 = arith.constant 0 : i32
    %c0_i32_1 = arith.constant 0 : i32
    return %c0_i32, %c0_i32_0 : i32, i32
  }
  func.func @transform_4(%arg0: i32) -> (i32, i32) {
    %c0_i32 = arith.constant 0 : i32
    %c0_i32_0 = arith.constant 0 : i32
    %c0_i32_1 = arith.constant 0 : i32
    return %c0_i32, %c0_i32_0 : i32, i32
  }
  func.func @transform_5(%arg0: i32) -> (i32, i32) {
    %c0_i32 = arith.constant 0 : i32
    %c0_i32_0 = arith.constant 0 : i32
    return %arg0, %c0_i32 : i32, i32
  }
}

</mosaic_0001>

<bundles_post_ra>
// kernel: featurizer_forward.1
= control target key start
LH: loop header
LB: loop body
LE: loop exit
PB: predicated region body
PF: predicated region fallthrough
CT: control target
= control target key end

     0   :  { %vm89_vm0 = vcmask 130048   ;;  %vm335_vm1 = vcmask 261120   ;;  %s695_s1 = inlined_call_operand.vmem [shape: bf16[16,32], index: 1, kind: input, shape index: {}]   ;;  %s696_s0 = inlined_call_operand.vmem [shape: bf16[128,16], index: 0, kind: input, shape index: {}]   ;;  %s697_s2 = inlined_call_operand.vmem [shape: f32[1,32], index: 2, kind: input, shape index: {}]   ;;  %s698_s3 = inlined_call_operand.vmem [shape: bf16[32,128], index: 3, kind: input, shape index: {}]   ;;  %s699_s4 = inlined_call_operand.vmem [shape: f32[1,128], index: 4, kind: input, shape index: {}]   ;;  %s700_s5 = inlined_call_operand.vmem [shape: f32[128,128], index: 5, kind: output, shape index: {}]  }
   0x1   :  { %v497_v0 = vld [vmem:[%s695_s1] sm:$0xff]  ;;  %v490_v2 = vld [vmem:[%s696_s0 + $0x8] sm:$0xff]  ;;  %v491_v4 = vld [vmem:[%s696_s0 + $0x10] sm:$0xff] }
   0x2   :  { %v489_v1 = vld [vmem:[%s696_s0] sm:$0xff]  ;;  %121 = vmatpush.bf16.msra.mxu0 %v497_v0  ;;  %500 = vmatpush.bf16.msra.mxu3 %v497_v0  ;;  %v494_v3 = vld [vmem:[%s696_s0 + $0x28] sm:$0xff]  ;;  %v495_v5 = vld [vmem:[%s696_s0 + $0x30] sm:$0xff] }
   0x3   :  { %v492_v6 = vld [vmem:[%s696_s0 + $0x18] sm:$0xff]  ;;  %v493_v8 = vld [vmem:[%s696_s0 + $0x20] sm:$0xff]  ;;  %v499_v9 = vld [vmem:[%s698_s3 + $0x8] sm:$0xff] }
   0x4   :  { %v496_v7 = vld [vmem:[%s696_s0 + $0x38] sm:$0xff]  ;;  %366 = vmatpush.bf16.msra.mxu1 %v499_v9  ;;  %501 = vmatpush.bf16.msra.mxu2 %v499_v9  ;;  %v608_v10 = vld [vmem:[%s697_s2] ss:$0 sm:$0xff] }
   0x5   :  { %465 = vmatmul.msk.bf16.vlgmr.msra.gmra.mxu0 %vm89_vm0, %v489_v1  ;;  %470 = vmatmul.msk.bf16.vlgmr.msra.gmra.mxu3 %vm89_vm0, %v494_v3  ;;  %v498_v11 = vld [vmem:[%s698_s3] sm:$0xff] }
   0x8   :  { %367 = vmatpush.bf16.msra.mxu1 %v498_v11  ;;  %502 = vmatpush.bf16.msra.mxu2 %v498_v11 }
  0x15   :  { %466 = vmatmul.msk.bf16.gmra.mxu0 %vm89_vm0, %v490_v2  ;;  %471 = vmatmul.msk.bf16.gmra.mxu3 %vm89_vm0, %v495_v5 }
  0x25   :  { %467 = vmatmul.msk.bf16.gmra.mxu0 %vm89_vm0, %v491_v4  ;;  %472 = vmatmul.msk.bf16.gmra.mxu3 %vm89_vm0, %v496_v7 }
  0x35   :  { %468 = vmatmul.msk.bf16.gmra.mxu0 %vm89_vm0, %v492_v6 }
  0x45   :  { %469 = vmatmul.msk.bf16.gmra.mxu0 %vm89_vm0, %v493_v8 }
  0x82   :  { %v123_v12 = vpop.f32.mrf.mxu0 }
  0x83   :  { %v124_v13 = vadd.f32 %v608_v10, %v123_v12 }
  0x85   :  { %v179_v14 = vmul.f32 0.044715, %v124_v13  ;;  %v163_v38 = vmul.f32 0.5, %v124_v13 }
  0x87   :  { %v195_v15 = vmul.f32 %v179_v14, %v124_v13 }
  0x88   :  { %v148_v9 = vpop.f32.mrf.mxu3 }
  0x89   :  { %v211_v16 = vmul.f32 %v195_v15, %v124_v13 }
  0x8a   :  { %v125_v17 = vpop.f32.mrf.mxu0 }
  0x8b   :  { %v126_v18 = vadd.f32 %v608_v10, %v125_v17  ;;  %v227_v19 = vadd.f32 %v211_v16, %v124_v13 }
  0x8d   :  { %v180_v20 = vmul.f32 0.044715, %v126_v18  ;;  %v243_v22 = vmul.f32 0.7978846, %v227_v19  ;;  %v164_v39 = vmul.f32 0.5, %v126_v18 }
  0x8f   :  { %v196_v21 = vmul.f32 %v180_v20, %v126_v18  ;;  %505 = vtanh.f32 %v243_v22 }
  0x90   :  { %v150_v22 = vpop.f32.mrf.mxu3 }
  0x91   :  { %v212_v23 = vmul.f32 %v196_v21, %v126_v18 }
  0x92   :  { %v128_v24 = vpop.f32.mrf.mxu0 }
  0x93   :  { %v129_v25 = vadd.f32 %v608_v10, %v128_v24  ;;  %v228_v26 = vadd.f32 %v212_v23, %v126_v18 }
  0x95   :  { %v181_v27 = vmul.f32 0.044715, %v129_v25  ;;  %v244_v28 = vmul.f32 0.7978846, %v228_v26  ;;  %v506_v30 = vpop.eup %505  ;;  %v165_v61 = vmul.f32 0.5, %v129_v25 }
  0x96   :  { %v275_v35 = vadd.f32 1.0, %v506_v30 }
  0x97   :  { %v197_v29 = vmul.f32 %v181_v27, %v129_v25  ;;  %507 = vtanh.f32 %v244_v28 }
  0x98   :  { %v291_v43 = vmul.f32 %v275_v35, %v163_v38  ;;  %v626_v38 = vadd.f32 %v608_v10, %v148_v9 }
  0x99   :  { %v213_v31 = vmul.f32 %v197_v29, %v129_v25 }
  0x9a   :  { %v130_v32 = vpop.f32.mrf.mxu0 }
  0x9b   :  { %v131_v33 = vadd.f32 %v608_v10, %v130_v32  ;;  %v229_v34 = vadd.f32 %v213_v31, %v129_v25 }
  0x9d   :  { %v508_v36 = vpop.eup %507  ;;  %v182_v37 = vmul.f32 0.044715, %v131_v33  ;;  %v245_v42 = vmul.f32 0.7978846, %v229_v34  ;;  %v166_v62 = vmul.f32 0.5, %v131_v33 }
  0x9e   :  { %v276_v40 = vadd.f32 1.0, %v508_v36 }
  0x9f   :  { %v198_v41 = vmul.f32 %v182_v37, %v131_v33  ;;  %509 = vtanh.f32 %v245_v42 }
  0xa0   :  { %v292_v44 = vmul.f32 %v276_v40, %v164_v39  ;;  %v153_v39 = vpop.f32.mrf.mxu3 }
  0xa1   :  { %v214_v45 = vmul.f32 %v198_v41, %v131_v33  ;;  %v151_v41 = vadd.f32 %v608_v10, %v150_v22 }
  0xa2   :  { %v133_v46 = vpop.f32.mrf.mxu0  ;;  %v307_v47 = vpack.c.bf16 %v292_v44, %v291_v43 }
  0xa3   :  { %v134_v48 = vadd.f32 %v608_v10, %v133_v46  ;;  %v230_v49 = vadd.f32 %v214_v45, %v131_v33  ;;  %v189_v46 = vmul.f32 0.044715, %v626_v38 }
  0xa4   :  { %481 = vmatmul.msk.bf16.vlgmr.msra.gmra.mxu1 %vm335_vm1, %v307_v47 }
  0xa5   :  { %v183_v50 = vmul.f32 0.044715, %v134_v48  ;;  %v246_v51 = vmul.f32 0.7978846, %v230_v49  ;;  %v510_v53 = vpop.eup %509  ;;  %v167_v23 = vmul.f32 0.5, %v134_v48 }
  0xa6   :  { %v277_v58 = vadd.f32 1.0, %v510_v53  ;;  %v190_v49 = vmul.f32 0.044715, %v151_v41 }
  0xa7   :  { %v199_v52 = vmul.f32 %v183_v50, %v134_v48  ;;  %511 = vtanh.f32 %v246_v51 }
  0xa8   :  { %v293_v2 = vmul.f32 %v277_v58, %v165_v61  ;;  %v155_v61 = vpop.f32.mrf.mxu3 }
  0xa9   :  { %v215_v54 = vmul.f32 %v199_v52, %v134_v48 }
  0xaa   :  { %v135_v55 = vpop.f32.mrf.mxu0 }
  0xab   :  { %v136_v56 = vadd.f32 %v608_v10, %v135_v55  ;;  %v231_v57 = vadd.f32 %v215_v54, %v134_v48 }
  0xad   :  { %v512_v59 = vpop.eup %511  ;;  %v184_v60 = vmul.f32 0.044715, %v136_v56  ;;  %v247_v1 = vmul.f32 0.7978846, %v231_v57  ;;  %v168_v24 = vmul.f32 0.5, %v136_v56 }
  0xae   :  { %v278_v63 = vadd.f32 1.0, %v512_v59  ;;  %v206_v59 = vmul.f32 %v190_v49, %v151_v41 }
  0xaf   :  { %v200_v0 = vmul.f32 %v184_v60, %v136_v56  ;;  %513 = vtanh.f32 %v247_v1 }
  0xb0   :  { %v294_v3 = vmul.f32 %v278_v63, %v166_v62  ;;  %v158_v9 = vpop.f32.mrf.mxu3 }
  0xb1   :  { %v216_v4 = vmul.f32 %v200_v0, %v136_v56 }
  0xb2   :  { %v138_v5 = vpop.f32.mrf.mxu0  ;;  %v308_v6 = vpack.c.bf16 %v294_v3, %v293_v2  ;;  %v222_v2 = vmul.f32 %v206_v59, %v151_v41  ;;  %v154_v3 = vadd.f32 %v608_v10, %v153_v39 }
  0xb3   :  { %v139_v7 = vadd.f32 %v608_v10, %v138_v5  ;;  %v232_v8 = vadd.f32 %v216_v4, %v136_v56  ;;  %v205_v56 = vmul.f32 %v189_v46, %v626_v38 }
  0xb4   :  { %482 = vmatmul.msk.bf16.gmra.mxu1 %vm335_vm1, %v308_v6  ;;  %v156_v6 = vadd.f32 %v608_v10, %v155_v61 }
  0xb5   :  { %v185_v11 = vmul.f32 0.044715, %v139_v7  ;;  %v248_v12 = vmul.f32 0.7978846, %v232_v8  ;;  %v514_v14 = vpop.eup %513  ;;  %v169_v51 = vmul.f32 0.5, %v139_v7  ;;  %v221_v0 = vmul.f32 %v205_v56, %v626_v38 }
  0xb6   :  { %v279_v19 = vadd.f32 1.0, %v514_v14  ;;  %v191_v8 = vmul.f32 0.044715, %v154_v3  ;;  %v192_v14 = vmul.f32 0.044715, %v156_v6 }
  0xb7   :  { %v201_v13 = vmul.f32 %v185_v11, %v139_v7  ;;  %515 = vtanh.f32 %v248_v12  ;;  %v237_v4 = vadd.f32 %v221_v0, %v626_v38 }
  0xb8   :  { %v295_v28 = vmul.f32 %v279_v19, %v167_v23  ;;  %v207_v19 = vmul.f32 %v191_v8, %v154_v3  ;;  %v208_v22 = vmul.f32 %v192_v14, %v156_v6 }
  0xb9   :  { %v217_v15 = vmul.f32 %v201_v13, %v139_v7  ;;  %v253_v12 = vmul.f32 0.7978846, %v237_v4 }
  0xba   :  { %v140_v16 = vpop.f32.mrf.mxu0 }
  0xbb   :  { %v141_v17 = vadd.f32 %v608_v10, %v140_v16  ;;  %v233_v18 = vadd.f32 %v217_v15, %v139_v7  ;;  %v238_v7 = vadd.f32 %v222_v2, %v151_v41 }
  0xbd   :  { %v516_v20 = vpop.eup %515  ;;  %v186_v21 = vmul.f32 0.044715, %v141_v17  ;;  %v249_v27 = vmul.f32 0.7978846, %v233_v18  ;;  %v170_v52 = vmul.f32 0.5, %v141_v17 }
  0xbe   :  { %v280_v25 = vadd.f32 1.0, %v516_v20  ;;  %v254_v15 = vmul.f32 0.7978846, %v238_v7 }
  0xbf   :  { %v202_v26 = vmul.f32 %v186_v21, %v141_v17  ;;  %517 = vtanh.f32 %v249_v27  ;;  %v160_v27 = vpop.f32.mrf.mxu3 }
  0xc0   :  { %v296_v29 = vmul.f32 %v280_v25, %v168_v24  ;;  %v223_v24 = vmul.f32 %v207_v19, %v154_v3  ;;  %v224_v25 = vmul.f32 %v208_v22, %v156_v6 }
  0xc1   :  { %v218_v30 = vmul.f32 %v202_v26, %v141_v17 }
  0xc2   :  { %v143_v31 = vpop.f32.mrf.mxu0  ;;  %v309_v32 = vpack.c.bf16 %v296_v29, %v295_v28  ;;  %v159_v29 = vadd.f32 %v608_v10, %v158_v9 }
  0xc3   :  { %v144_v33 = vadd.f32 %v608_v10, %v143_v31  ;;  %v234_v34 = vadd.f32 %v218_v30, %v141_v17  ;;  %v239_v30 = vadd.f32 %v223_v24, %v154_v3  ;;  %v161_v31 = vadd.f32 %v608_v10, %v160_v27 }
  0xc4   :  { %483 = vmatmul.msk.bf16.gmra.mxu1 %vm335_vm1, %v309_v32  ;;  %v240_v32 = vadd.f32 %v224_v25, %v156_v6 }
  0xc5   :  { %v187_v35 = vmul.f32 0.044715, %v144_v33  ;;  %v250_v36 = vmul.f32 0.7978846, %v234_v34  ;;  %v518_v40 = vpop.eup %517  ;;  %v171_v16 = vmul.f32 0.5, %v144_v33  ;;  %v174_v34 = vmul.f32 0.5, %v151_v41 }
  0xc6   :  { %v281_v47 = vadd.f32 1.0, %v518_v40  ;;  %v255_v39 = vmul.f32 0.7978846, %v239_v30  ;;  %v194_v40 = vmul.f32 0.044715, %v161_v31 }
  0xc7   :  { %v203_v37 = vmul.f32 %v187_v35, %v144_v33  ;;  %519 = vtanh.f32 %v250_v36 }
  0xc8   :  { %v297_v57 = vmul.f32 %v281_v47, %v169_v51  ;;  %v210_v46 = vmul.f32 %v194_v40, %v161_v31  ;;  %v175_v51 = vmul.f32 0.5, %v154_v3 }
  0xc9   :  { %v219_v42 = vmul.f32 %v203_v37, %v144_v33  ;;  %v193_v37 = vmul.f32 0.044715, %v159_v29 }
  0xca   :  { %v145_v43 = vpop.f32.mrf.mxu0 }
  0xcb   :  { %v146_v44 = vadd.f32 %v608_v10, %v145_v43  ;;  %v235_v45 = vadd.f32 %v219_v42, %v144_v33  ;;  %v173_v33 = vmul.f32 0.5, %v626_v38  ;;  %v256_v42 = vmul.f32 0.7978846, %v240_v32 }
  0xcd   :  { %v520_v48 = vpop.eup %519  ;;  %v188_v50 = vmul.f32 0.044715, %v146_v44  ;;  %v251_v55 = vmul.f32 0.7978846, %v235_v45  ;;  %v172_v17 = vmul.f32 0.5, %v146_v44  ;;  %v209_v45 = vmul.f32 %v193_v37, %v159_v29 }
  0xce   :  { %v282_v53 = vadd.f32 1.0, %v520_v48  ;;  %v226_v48 = vmul.f32 %v210_v46, %v161_v31 }
  0xcf   :  { %v204_v54 = vmul.f32 %v188_v50, %v146_v44  ;;  %521 = vtanh.f32 %v251_v55  ;;  %v225_v10 = vmul.f32 %v209_v45, %v159_v29 }
  0xd0   :  { %v298_v58 = vmul.f32 %v282_v53, %v170_v52  ;;  %v242_v50 = vadd.f32 %v226_v48, %v161_v31  ;;  %v176_v52 = vmul.f32 0.5, %v156_v6 }
  0xd1   :  { %v220_v60 = vmul.f32 %v204_v54, %v146_v44  ;;  %v241_v41 = vadd.f32 %v225_v10, %v159_v29 }
  0xd2   :  { %v310_v62 = vpack.c.bf16 %v298_v58, %v297_v57  ;;  %v258_v56 = vmul.f32 0.7978846, %v242_v50 }
  0xd3   :  { %v236_v63 = vadd.f32 %v220_v60, %v146_v44  ;;  %v257_v55 = vmul.f32 0.7978846, %v241_v41 }
  0xd4   :  { %484 = vmatmul.msk.bf16.gmra.mxu1 %vm335_vm1, %v310_v62  ;;  %v177_v62 = vmul.f32 0.5, %v159_v29 }
  0xd5   :  { %v252_v1 = vmul.f32 0.7978846, %v236_v63  ;;  %v522_v5 = vpop.eup %521  ;;  %v178_v63 = vmul.f32 0.5, %v161_v31 }
  0xd6   :  { %v283_v11 = vadd.f32 1.0, %v522_v5  ;;  %v504_v5 = vld [vmem:[%s699_s4] ss:$0 sm:$0xff] }
  0xd7   :  { %523 = vtanh.f32 %v252_v1 }
  0xd8   :  { %v299_v20 = vmul.f32 %v283_v11, %v171_v16  ;;  %525 = vtanh.f32 %v253_v12 }
  0xd9   :  { %527 = vtanh.f32 %v254_v15 }
  0xda   :  { %529 = vtanh.f32 %v255_v39 }
  0xdb   :  { %531 = vtanh.f32 %v256_v42 }
  0xdc   :  { %533 = vtanh.f32 %v257_v55 }
  0xdd   :  { %v524_v13 = vpop.eup %523  ;;  %535 = vtanh.f32 %v258_v56 }
  0xde   :  { %v284_v18 = vadd.f32 1.0, %v524_v13  ;;  %v526_v26 = vpop.eup %525 }
  0xdf   :  { %v528_v28 = vpop.eup %527  ;;  %v285_v35 = vadd.f32 1.0, %v526_v26 }
  0xe0   :  { %v300_v21 = vmul.f32 %v284_v18, %v172_v17  ;;  %v286_v36 = vadd.f32 1.0, %v528_v28  ;;  %v530_v49 = vpop.eup %529 }
  0xe1   :  { %v301_v43 = vmul.f32 %v285_v35, %v173_v33  ;;  %v532_v38 = vpop.eup %531  ;;  %v287_v53 = vadd.f32 1.0, %v530_v49 }
  0xe2   :  { %v311_v23 = vpack.c.bf16 %v300_v21, %v299_v20  ;;  %v302_v44 = vmul.f32 %v286_v36, %v174_v34  ;;  %v288_v54 = vadd.f32 1.0, %v532_v38  ;;  %v534_v60 = vpop.eup %533 }
  0xe3   :  { %v303_v57 = vmul.f32 %v287_v53, %v175_v51  ;;  %v536_v61 = vpop.eup %535  ;;  %v289_v0 = vadd.f32 1.0, %v534_v60 }
  0xe4   :  { %485 = vmatmul.msk.bf16.vlgmr.msra.gmra.mxu2 %vm335_vm1, %v311_v23  ;;  %v312_v47 = vpack.c.bf16 %v302_v44, %v301_v43  ;;  %v304_v58 = vmul.f32 %v288_v54, %v176_v52  ;;  %v290_v1 = vadd.f32 1.0, %v536_v61 }
  0xe5   :  { %v305_v2 = vmul.f32 %v289_v0, %v177_v62 }
  0xe6   :  { %v313_v59 = vpack.c.bf16 %v304_v58, %v303_v57  ;;  %v306_v3 = vmul.f32 %v290_v1, %v178_v63 }
  0xe8   :  { %v314_v4 = vpack.c.bf16 %v306_v3, %v305_v2 }
  0xf4   :  { %486 = vmatmul.msk.bf16.gmra.mxu2 %vm335_vm1, %v312_v47 }
 0x104   :  { %487 = vmatmul.msk.bf16.gmra.mxu2 %vm335_vm1, %v313_v59 }
 0x114   :  { %488 = vmatmul.msk.bf16.gmra.mxu2 %vm335_vm1, %v314_v4 }
 0x121   :  { %v369_v6 = vpop.f32.mrf.mxu1 }
 0x122   :  { %v370_v7 = vadd.f32 %v504_v5, %v369_v6 }
 0x124   :  { %409 = vst [vmem:[%s700_s5] sm:$0xff] %v370_v7 }
 0x129   :  { %v371_v8 = vpop.f32.mrf.mxu1 }
 0x12a   :  { %v372_v9 = vadd.f32 %v504_v5, %v371_v8 }
 0x12c   :  { %410 = vst [vmem:[%s700_s5 + $0x8] sm:$0xff] %v372_v9 }
 0x131   :  { %v374_v11 = vpop.f32.mrf.mxu1 }
 0x132   :  { %v375_v12 = vadd.f32 %v504_v5, %v374_v11 }
 0x134   :  { %411 = vst [vmem:[%s700_s5 + $0x10] sm:$0xff] %v375_v12 }
 0x139   :  { %v376_v13 = vpop.f32.mrf.mxu1 }
 0x13a   :  { %v377_v14 = vadd.f32 %v504_v5, %v376_v13 }
 0x13c   :  { %412 = vst [vmem:[%s700_s5 + $0x18] sm:$0xff] %v377_v14 }
 0x141   :  { %v379_v15 = vpop.f32.mrf.mxu1 }
 0x142   :  { %v380_v16 = vadd.f32 %v504_v5, %v379_v15 }
 0x144   :  { %413 = vst [vmem:[%s700_s5 + $0x20] sm:$0xff] %v380_v16 }
 0x149   :  { %v381_v17 = vpop.f32.mrf.mxu1 }
 0x14a   :  { %v382_v18 = vadd.f32 %v504_v5, %v381_v17 }
 0x14c   :  { %414 = vst [vmem:[%s700_s5 + $0x28] sm:$0xff] %v382_v18 }
 0x151   :  { %v384_v19 = vpop.f32.mrf.mxu1 }
 0x152   :  { %v385_v20 = vadd.f32 %v504_v5, %v384_v19 }
 0x154   :  { %415 = vst [vmem:[%s700_s5 + $0x30] sm:$0xff] %v385_v20 }
 0x159   :  { %v386_v21 = vpop.f32.mrf.mxu1 }
 0x15a   :  { %v387_v22 = vadd.f32 %v504_v5, %v386_v21 }
 0x15c   :  { %416 = vst [vmem:[%s700_s5 + $0x38] sm:$0xff] %v387_v22 }
 0x167   :  { %v389_v23 = vpop.f32.mrf.mxu2 }
 0x168   :  { %v390_v24 = vadd.f32 %v504_v5, %v389_v23 }
 0x16a   :  { %417 = vst [vmem:[%s700_s5 + $0x40] sm:$0xff] %v390_v24 }
 0x16f   :  { %v391_v25 = vpop.f32.mrf.mxu2 }
 0x170   :  { %v392_v26 = vadd.f32 %v504_v5, %v391_v25 }
 0x172   :  { %418 = vst [vmem:[%s700_s5 + $0x48] sm:$0xff] %v392_v26 }
 0x177   :  { %v394_v27 = vpop.f32.mrf.mxu2 }
 0x178   :  { %v395_v28 = vadd.f32 %v504_v5, %v394_v27 }
 0x17a   :  { %419 = vst [vmem:[%s700_s5 + $0x50] sm:$0xff] %v395_v28 }
 0x17f   :  { %v396_v29 = vpop.f32.mrf.mxu2 }
 0x180   :  { %v397_v30 = vadd.f32 %v504_v5, %v396_v29 }
 0x182   :  { %420 = vst [vmem:[%s700_s5 + $0x58] sm:$0xff] %v397_v30 }
 0x187   :  { %v399_v31 = vpop.f32.mrf.mxu2 }
 0x188   :  { %v400_v32 = vadd.f32 %v504_v5, %v399_v31 }
 0x18a   :  { %421 = vst [vmem:[%s700_s5 + $0x60] sm:$0xff] %v400_v32 }
 0x18f   :  { %v401_v33 = vpop.f32.mrf.mxu2 }
 0x190   :  { %v402_v34 = vadd.f32 %v504_v5, %v401_v33 }
 0x192   :  { %422 = vst [vmem:[%s700_s5 + $0x68] sm:$0xff] %v402_v34 }
 0x197   :  { %v404_v35 = vpop.f32.mrf.mxu2 }
 0x198   :  { %v405_v36 = vadd.f32 %v504_v5, %v404_v35 }
 0x19a   :  { %423 = vst [vmem:[%s700_s5 + $0x70] sm:$0xff] %v405_v36 }
 0x19f   :  { %v406_v37 = vpop.f32.mrf.mxu2 }
 0x1a0   :  { %v407_v39 = vadd.f32 %v504_v5, %v406_v37 }
 0x1a2   :  { %424 = vst [vmem:[%s700_s5 + $0x78] sm:$0xff] %v407_v39 }

</bundles_post_ra>
